<compile_context>
chip_gen: v5e
topology: v5e:2x2
jax: 0.10.0
libtpu: 0.0.40
codegen_flags: <defaults>
</compile_context>

<pallas_src>
import functools

import jax
import jax.numpy as jnp
from jax.experimental import pallas as pl
from jax.experimental.pallas import tpu as pltpu


def _round_up(x, m):
    return ((x + m - 1) // m) * m


# --------------------------------------------------------------------------
# Pallas kernels: fused (Linear no-bias) + snn.Leaky (beta, threshold=1,
# reset="subtract", fast_sigmoid forward == heaviside) on flat (rows, O) data.
# --------------------------------------------------------------------------

def _spiking_linear_kernel_nomem(x_ref, w_ref, spk_ref, mem_ref, *, threshold):
    # First timestep: previous membrane is all zeros, so reset == 0 and
    # mem_new == syn.  No N x O zeros tensor is ever read from HBM.
    syn = jnp.dot(x_ref[...], w_ref[...], preferred_element_type=jnp.float32)
    spk_ref[...] = (syn - threshold > 0.0).astype(spk_ref.dtype)
    mem_ref[...] = syn


def _spiking_linear_kernel_mem(x_ref, w_ref, mem_in_ref, spk_ref, mem_ref, *,
                               beta, decay_rate, threshold):
    syn = jnp.dot(x_ref[...], w_ref[...], preferred_element_type=jnp.float32)
    # Module applies the external decay before calling the LIF neuron:
    #   self.mem = self.mem.detach() * self.decay_rate
    mem = mem_in_ref[...] * decay_rate
    # snn.Leaky: reset from incoming mem, "subtract" mechanism, heaviside spike.
    reset = (mem - threshold > 0.0).astype(jnp.float32)
    mem_new = beta * mem + syn - reset * threshold
    spk_ref[...] = (mem_new - threshold > 0.0).astype(spk_ref.dtype)
    mem_ref[...] = mem_new


def spiking_linear_flat(x_rows, w_t, mem_rows=None, *, beta=0.9,
                        decay_rate=0.95, threshold=1.0,
                        spike_dtype=jnp.float32, row_tile=1024,
                        vmem_budget_bytes=12 * 1024 * 1024):
    """Fused linear + Leaky-LIF on a flat row layout.

    x_rows   : (N, E) float32, N = batch*seq*flattened_dim rows, E = in_features.
    w_t      : (E, O) pre-transposed weight (may be several layers fused along O).
    mem_rows : (N, O) membrane state from the previous timestep, or None.

    Returns (spikes (N, O) spike_dtype, new_membrane (N, O) float32).
    """
    N, E = x_rows.shape
    O = w_t.shape[1]
    spk_bytes = jnp.dtype(spike_dtype).itemsize

    # --- row-tile selection --------------------------------------------------
    # (a) keep >= 2 grid steps when possible so v7x's two TensorCores both get
    #     work under dimension_semantics=("parallel",);
    # (b) clamp so the double-buffered per-step footprint fits v5e's 16 MiB
    #     scoped-VMEM default with headroom (also safe for v7x's 32 MiB).
    row_tile = max(8, _round_up(int(row_tile), 8))
    two_step_tile = max(8, _round_up(pl.cdiv(N, 2), 8))
    row_tile = min(row_tile, two_step_tile)

    def _footprint(t):
        per_step = t * (E * 4                                       # x tile
                        + O * spk_bytes                             # spike tile
                        + O * 4                                     # mem-out tile
                        + (O * 4 if mem_rows is not None else 0))   # mem-in tile
        return 2 * per_step + 2 * E * O * 4                         # dbl-buffered + weight

    while row_tile > 8 and _footprint(row_tile) > vmem_budget_bytes:
        row_tile = max(8, _round_up(row_tile // 2, 8))

    # Ragged last block (N % row_tile != 0) is masked by Pallas — no jnp.pad
    # copies and no post-slice, so the membrane alias hits the real buffer.
    grid = (pl.cdiv(N, row_tile),)

    row_in_spec = pl.BlockSpec((row_tile, E), lambda i: (i, 0))
    w_spec = pl.BlockSpec((E, O), lambda i: (0, 0))
    row_out_spec = pl.BlockSpec((row_tile, O), lambda i: (i, 0))

    out_shape = (jax.ShapeDtypeStruct((N, O), spike_dtype),    # spikes
                 jax.ShapeDtypeStruct((N, O), jnp.float32))    # new membrane
    out_specs = (row_out_spec,
                 pl.BlockSpec((row_tile, O), lambda i: (i, 0)))

    bytes_out = N * O * (spk_bytes + 4)
    if mem_rows is None:
        kernel = functools.partial(_spiking_linear_kernel_nomem,
                                   threshold=threshold)
        in_specs = [row_in_spec, w_spec]
        operands = (x_rows, w_t)
        aliases = {}
        bytes_in = (N * E + E * O) * 4
    else:
        kernel = functools.partial(_spiking_linear_kernel_mem, beta=beta,
                                   decay_rate=decay_rate, threshold=threshold)
        in_specs = [row_in_spec, w_spec,
                    pl.BlockSpec((row_tile, O), lambda i: (i, 0))]
        operands = (x_rows, w_t, mem_rows)
        aliases = {2: 1}   # membrane state updated in place (input 2 -> output 1)
        bytes_in = (N * E + E * O + N * O) * 4

    spk, mem_new = pl.pallas_call(
        kernel,
        out_shape=out_shape,
        grid_spec=pltpu.PrefetchScalarGridSpec(
            num_scalar_prefetch=0,
            grid=grid,
            in_specs=in_specs,
            out_specs=out_specs,
        ),
        input_output_aliases=aliases,
        compiler_params=pltpu.CompilerParams(
            dimension_semantics=("parallel",)),
        cost_estimate=pl.CostEstimate(
            flops=2 * N * E * O,
            transcendentals=0,
            bytes_accessed=bytes_in + bytes_out),
    )(*operands)
    return spk, mem_new


# --------------------------------------------------------------------------
# Full PhaseShiftedSpikingSelfAttention forward.
# --------------------------------------------------------------------------

def prepare_attention_params(weights):
    """One-time weight layout prep (hoisted out of the per-timestep path).

    weights: dict of (E, E) nn.Linear weights keyed 'q','k','v','out'.
    Returns {'qkv': (E, 3E) fused transposed weight, 'out': (E, E) transposed}.
    """
    w_qkv = jnp.concatenate(
        [weights['q'].T, weights['k'].T, weights['v'].T], axis=1)
    return {'qkv': w_qkv, 'out': weights['out'].T}


def phase_shifted_spiking_self_attention(x, params, state, *, num_heads,
                                         beta=0.9, decay_rate=0.95,
                                         row_tile=1024):
    """x: (B, S, E, F).  params from prepare_attention_params().
    state: {} on the first timestep, else {'qkv': (N, 3E), 'out': (N, E)}.

    Returns (output (B, S, E, F) float32, new_state dict).
    """
    B, S, E, F = x.shape
    H = num_heads
    D = E // H
    N = B * S * F

    # Single layout change shared by all projections: (B,S,E,F) -> (N,E).
    x_rows = jnp.transpose(x, (0, 1, 3, 2)).reshape(N, E)

    # Fused q/k/v projection: one kernel, one pass over x_rows, 3*E-wide stores.
    # Spikes are bf16 (exact 0/1) to halve spike write + attention read traffic.
    qkv_spk, mem_qkv = spiking_linear_flat(
        x_rows, params['qkv'], state.get('qkv'),
        beta=beta, decay_rate=decay_rate,
        spike_dtype=jnp.bfloat16, row_tile=row_tile)

    q5 = qkv_spk[:, 0 * E:1 * E].reshape(B, S, F, H, D)
    k5 = qkv_spk[:, 1 * E:2 * E].reshape(B, S, F, H, D)
    v5 = qkv_spk[:, 2 * E:3 * E].reshape(B, S, F, H, D)

    # Spike attention.  The module contracts over (head_dim, flattened_dim)
    # jointly, so the contraction is layout independent:
    #   einsum('bqhdf,bkhdf->bqhk') == einsum('bqfhd,bkfhd->bqhk').
    # bf16 spikes with f32 accumulation are exact for 0/1 values; scores /
    # attended stay f32 (integer sums can exceed bf16's exact range).
    # TODO(synk): fuse projections + score/attend + out-projection into one
    # per-batch kernel keeping spikes in VMEM (next ~2-3x); kept in XLA here.
    scores = jnp.einsum('bqfhd,bkfhd->bqhk', q5, k5,
                        preferred_element_type=jnp.float32)
    attended = jnp.einsum('bqhk,bkfhd->bqfhd', scores,
                          v5.astype(jnp.float32),
                          preferred_element_type=jnp.float32)

    # The out_layer consumes exactly this row layout — no transpose needed.
    att_rows = attended.reshape(N, E)
    o_flat, mem_o = spiking_linear_flat(
        att_rows, params['out'], state.get('out'),
        beta=beta, decay_rate=decay_rate,
        spike_dtype=jnp.float32, row_tile=row_tile)   # module-boundary output stays f32

    # Only remaining layout change: (B,S,F,O) -> (B,S,O,F), the module output.
    output = jnp.transpose(o_flat.reshape(B, S, F, E), (0, 1, 3, 2))
    new_state = {'qkv': mem_qkv, 'out': mem_o}
    return output, new_state


# --------------------------------------------------------------------------
# Pure-JAX reference that mirrors the PyTorch module literally.
# --------------------------------------------------------------------------

def _ref_spiking_linear(x, weight, mem, *, beta, decay_rate, threshold=1.0):
    B, S, E, F = x.shape
    O = weight.shape[0]
    x2 = jnp.transpose(x, (0, 1, 3, 2)).reshape(-1, E)
    syn = jnp.dot(x2, weight.T, precision=jax.lax.Precision.HIGHEST)
    syn = syn.reshape(B, S, F, O)
    if mem is None:
        mem = jnp.zeros_like(syn)
    mem = mem * decay_rate
    reset = (mem - threshold > 0.0).astype(jnp.float32)
    mem_new = beta * mem + syn - reset * threshold
    spk = (mem_new - threshold > 0.0).astype(jnp.float32)
    return jnp.transpose(spk, (0, 1, 3, 2)), mem_new


def _ref_attention(x, weights, mems, *, num_heads, beta, decay_rate):
    B, S, E, F = x.shape
    H, D = num_heads, E // num_heads
    q, mq = _ref_spiking_linear(x, weights['q'], mems['q'], beta=beta, decay_rate=decay_rate)
    k, mk = _ref_spiking_linear(x, weights['k'], mems['k'], beta=beta, decay_rate=decay_rate)
    v, mv = _ref_spiking_linear(x, weights['v'], mems['v'], beta=beta, decay_rate=decay_rate)
    q5 = q.reshape(B, S, H, D, F)
    k5 = k.reshape(B, S, H, D, F)
    v5 = v.reshape(B, S, H, D, F)
    scores = jnp.einsum('bqhdf,bkhdf->bqhk', q5, k5)
    att = jnp.einsum('bqhk,bkhdf->bqhdf', scores, v5).reshape(B, S, E, F)
    o, mo = _ref_spiking_linear(att, weights['out'], mems['out'], beta=beta, decay_rate=decay_rate)
    return o, {'q': mq, 'k': mk, 'v': mv, 'out': mo}


if __name__ == "__main__":
    B, S, E, F = 2, 8, 32, 16     # batch, seq_len, embedding_dim, flattened_dim
    H = 4                         # num_heads (head_dim = 8)
    beta, decay_rate = 0.9, 0.95
    N = B * S * F

    key = jax.random.PRNGKey(0)
    kx1, kx2, kq, kk, kv, ko = jax.random.split(key, 6)

    # Integer-valued inputs and 1/16-quantized weights make every matmul exactly
    # representable in f32, so the strict `> threshold` spike decisions are
    # bit-reproducible between the Pallas kernels and the XLA reference.
    def rand_x(k):
        return jax.random.randint(k, (B, S, E, F), -3, 4).astype(jnp.float32)

    def rand_w(k):
        return jax.random.randint(k, (E, E), -4, 5).astype(jnp.float32) / 16.0

    x1 = rand_x(kx1)
    x2 = rand_x(kx2)
    weights = {'q': rand_w(kq), 'k': rand_w(kk), 'v': rand_w(kv), 'out': rand_w(ko)}
    params = prepare_attention_params(weights)   # one-time, hoisted off the timestep path

    # ---- timestep 1: exercises the no-mem kernel variant ----
    out1, state1 = phase_shifted_spiking_self_attention(
        x1, params, {}, num_heads=H, beta=beta, decay_rate=decay_rate)
    out1 = jax.block_until_ready(out1)

    none_state = {'q': None, 'k': None, 'v': None, 'out': None}
    ref1, ref_state1 = _ref_attention(x1, weights, none_state,
                                      num_heads=H, beta=beta, decay_rate=decay_rate)

    assert out1.shape == (B, S, E, F), out1.shape
    assert out1.dtype == jnp.float32, out1.dtype
    assert jnp.array_equal(out1, ref1), "step-1 output mismatch vs reference"
    ref_mem_qkv1 = jnp.concatenate(
        [ref_state1[n].reshape(N, E) for n in ('q', 'k', 'v')], axis=1)
    assert jnp.allclose(state1['qkv'], ref_mem_qkv1, atol=1e-5), \
        "step-1 fused q/k/v membrane mismatch"
    assert jnp.allclose(state1['out'], ref_state1['out'].reshape(N, E),
                        atol=1e-5), "step-1 out-layer membrane mismatch"

    # ---- timestep 2: exercises the stateful (mem-aliased) kernel variant ----
    out2, state2 = phase_shifted_spiking_self_attention(
        x2, params, state1, num_heads=H, beta=beta, decay_rate=decay_rate)
    out2 = jax.block_until_ready(out2)

    ref2, _ = _ref_attention(x2, weights, ref_state1,
                             num_heads=H, beta=beta, decay_rate=decay_rate)
    assert jnp.array_equal(out2, ref2), "step-2 output mismatch vs reference"

    jax.block_until_ready((out2, state2))
    print("KERNEL_OK")
</pallas_src>

<mosaic_0001>
module attributes {stable_mosaic.version = 11 : i64} {
  func.func @_spiking_linear_kernel_nomem(%arg0: i32, %arg1: memref<128x32xf32, #tpu.memory_space<vmem>>, %arg2: memref<32x96xf32, #tpu.memory_space<vmem>>, %arg3: memref<128x96xbf16, #tpu.memory_space<vmem>>, %arg4: memref<128x96xf32, #tpu.memory_space<vmem>>) attributes {dimension_semantics = [#tpu.dimension_semantics<parallel>], iteration_bounds = array<i64: 2>, scalar_prefetch = 0 : i64, scratch_operands = 0 : i64, tpu.core_type = #tpu.core_type<tc>, window_params = [{transform_indices = @transform_0, window_bounds = array<i64: 128, 32>}, {pipeline_mode = #tpu.pipeline_mode<synchronous>, transform_indices = @transform_1, window_bounds = array<i64: 32, 96>}, {transform_indices = @transform_2, window_bounds = array<i64: 128, 96>}, {transform_indices = @transform_3, window_bounds = array<i64: 128, 96>}]} {
    %c0 = arith.constant 0 : index
    %c0_0 = arith.constant 0 : index
    %0 = vector.load %arg1[%c0, %c0_0] : memref<128x32xf32, #tpu.memory_space<vmem>>, vector<128x32xf32>
    %c0_1 = arith.constant 0 : index
    %c0_2 = arith.constant 0 : index
    %1 = vector.load %arg2[%c0_1, %c0_2] : memref<32x96xf32, #tpu.memory_space<vmem>>, vector<32x96xf32>
    %cst = arith.constant dense<0.000000e+00> : vector<128x96xf32>
    %2 = tpu.matmul %0, %1, %cst {dimension_numbers = #tpu.dot_dimension_numbers<[1], [0], [0], [1], [0, 0, 1, 1], [], []>} : vector<128x32xf32>, vector<32x96xf32>, vector<128x96xf32> -> vector<128x96xf32>
    %cst_3 = arith.constant 1.000000e+00 : f32
    %3 = vector.broadcast %cst_3 : f32 to vector<128x96xf32>
    %4 = arith.subf %2, %3 : vector<128x96xf32>
    %cst_4 = arith.constant 0.000000e+00 : f32
    %5 = vector.broadcast %cst_4 : f32 to vector<128x96xf32>
    %6 = arith.cmpf ogt, %4, %5 : vector<128x96xf32>
    %7 = arith.extui %6 : vector<128x96xi1> to vector<128x96xi32>
    %8 = arith.sitofp %7 : vector<128x96xi32> to vector<128x96xf32>
    %9 = arith.truncf %8 : vector<128x96xf32> to vector<128x96xbf16>
    %c0_5 = arith.constant 0 : index
    %c0_6 = arith.constant 0 : index
    %10 = vector.load %arg3[%c0_5, %c0_6] : memref<128x96xbf16, #tpu.memory_space<vmem>>, vector<128x96xbf16>
    tpu.vector_store %arg3[%c0_5, %c0_6], %9 {strides = array<i32>} : memref<128x96xbf16, #tpu.memory_space<vmem>>, vector<128x96xbf16>,
    %c0_7 = arith.constant 0 : index
    %c0_8 = arith.constant 0 : index
    %11 = vector.load %arg4[%c0_7, %c0_8] : memref<128x96xf32, #tpu.memory_space<vmem>>, vector<128x96xf32>
    tpu.vector_store %arg4[%c0_7, %c0_8], %2 {strides = array<i32>} : memref<128x96xf32, #tpu.memory_space<vmem>>, vector<128x96xf32>,
    return
  }
  func.func @transform_0(%arg0: i32) -> (i32, i32) {
    %c0_i32 = arith.constant 0 : i32
    %c0_i32_0 = arith.constant 0 : i32
    return %arg0, %c0_i32 : i32, i32
  }
  func.func @transform_1(%arg0: i32) -> (i32, i32) {
    %c0_i32 = arith.constant 0 : i32
    %c0_i32_0 = arith.constant 0 : i32
    %c0_i32_1 = arith.constant 0 : i32
    return %c0_i32, %c0_i32_0 : i32, i32
  }
  func.func @transform_2(%arg0: i32) -> (i32, i32) {
    %c0_i32 = arith.constant 0 : i32
    %c0_i32_0 = arith.constant 0 : i32
    return %arg0, %c0_i32 : i32, i32
  }
  func.func @transform_3(%arg0: i32) -> (i32, i32) {
    %c0_i32 = arith.constant 0 : i32
    %c0_i32_0 = arith.constant 0 : i32
    return %arg0, %c0_i32 : i32, i32
  }
}

</mosaic_0001>

<bundles_post_ra>
// kernel: tpu_custom_call.1
= control target key start
LH: loop header
LB: loop body
LE: loop exit
PB: predicated region body
PF: predicated region fallthrough
CT: control target
= control target key end

     0   :  { %s637_s12 = smov 0   ;;  %s795_s0 = inlined_call_operand.vmem [shape: f32[256,32], index: 0, kind: input, shape index: {}]   ;;  %s796_s1 = inlined_call_operand.vmem [shape: f32[32,96], index: 1, kind: input, shape index: {}]   ;;  %s797_s2 = inlined_call_operand.vmem [shape: bf16[256,96], index: 2, kind: output, shape index: {0}]   ;;  %s798_s3 = inlined_call_operand.vmem [shape: f32[256,96], index: 3, kind: output, shape index: {1}]  }
   0x1 LB: > { %s526_s13 = sadd.s32 4294967295, %s614_s12   ;;  %p530_p0 = scmp.ge.s32.totalorder %s614_s12, 1  ;;  %s614_s12 = sphi %s637_s12, %s14_s12  }
   0x2   : > { %p141_p1 = scmp.lt.s32.totalorder %s614_s12, 3 }
   0x4   : > { %p142_p2 = pnand %p530_p0, %p141_p1 }
   0x5   : > { %s531_s18 = sshll.u32 (!%p142_p2), %s526_s13, 4 }
   0x6   : > { %145 = sbr.rel (%p142_p2) target bundleno = 183 (0xb7), region = 28  ;;  %p171_p3 = scmp.lt.s32.totalorder (!%p142_p2), %s531_s18, 31 }
   0xb   : > { %v207_v0 = vld [vmem:[%s796_s1 + $0x18] sm:$0xff]  ;;  %v206_v1 = vld [vmem:[%s796_s1 + $0x10] sm:$0xff]  ;;  %v205_v2 = vld [vmem:[%s796_s1 + $0x8] sm:$0xff]  ;;  %s800_s18 = smov (!%p171_p3, %s531_s18), 31  ;;  %vm208_vm0 = vcmask 261120   ;;  %vm419_vm1 = vcmask 785408  }
   0xc   : > { %588 = vmatpush.msra.mxu2 %v207_v0  ;;  %589 = vmatpush.msra.mxu3 %v207_v0  ;;  %v204_v3 = vld [vmem:[%s796_s1] sm:$0xff]  ;;  %s532_s23 = sshll.u32 %s800_s18, 3  ;;  %s534_s30 = sshll.u32 %s800_s18, 2  ;;  %v616_v24 = vmov 0.0   ;;  %vm402_vm4 = vcmask 781312  }
   0xd   : > { %269 = vmatpush.msra.mxu0 %v207_v0  ;;  %587 = vmatpush.msra.mxu1 %v207_v0  ;;  %s665_s26 = scalar_lea.vmem %s795_s0, %s532_s23  ;;  %s704_s29 = scalar_lea.vmem %s798_s3, %s532_s23 }
   0xe   : > { %591 = vmatpush.msra.mxu2 %v206_v1  ;;  %592 = vmatpush.msra.mxu3 %v206_v1  ;;  %v196_v4 = vld [vmem:[%s665_s26 + $0x40] sm:$0xff]  ;;  %v197_v8 = vld [vmem:[%s665_s26 + $0x48] sm:$0xff]  ;;  %v198_v12 = vld [vmem:[%s665_s26 + $0x50] sm:$0xff]  ;;  %s714_s6 = scalar_lea.vmem %s797_s2, %s534_s30 }
   0xf   : > { %270 = vmatpush.msra.mxu0 %v206_v1  ;;  %590 = vmatpush.msra.mxu1 %v206_v1  ;;  %v200_v5 = vld [vmem:[%s665_s26 + $0x60] sm:$0xff]  ;;  %v201_v9 = vld [vmem:[%s665_s26 + $0x68] sm:$0xff]  ;;  %v202_v13 = vld [vmem:[%s665_s26 + $0x70] sm:$0xff] }
  0x10   : > { %594 = vmatpush.msra.mxu2 %v205_v2  ;;  %595 = vmatpush.msra.mxu3 %v205_v2  ;;  %v188_v6 = vld [vmem:[%s665_s26] sm:$0xff]  ;;  %v189_v10 = vld [vmem:[%s665_s26 + $0x8] sm:$0xff]  ;;  %v190_v14 = vld [vmem:[%s665_s26 + $0x10] sm:$0xff] }
  0x11   : > { %271 = vmatpush.msra.mxu0 %v205_v2  ;;  %593 = vmatpush.msra.mxu1 %v205_v2  ;;  %v192_v7 = vld [vmem:[%s665_s26 + $0x20] sm:$0xff]  ;;  %v193_v11 = vld [vmem:[%s665_s26 + $0x28] sm:$0xff]  ;;  %v194_v15 = vld [vmem:[%s665_s26 + $0x30] sm:$0xff] }
  0x12   : > { %597 = vmatpush.msra.mxu2 %v204_v3  ;;  %598 = vmatpush.msra.mxu3 %v204_v3  ;;  %v199_v16 = vld [vmem:[%s665_s26 + $0x58] sm:$0xff] }
  0x13   : > { %545 = vmatmul.msk.f32.vlgmr.msra.gmra.mxu2 %vm208_vm0, %v196_v4  ;;  %549 = vmatmul.msk.f32.vlgmr.msra.gmra.mxu3 %vm208_vm0, %v200_v5  ;;  %v203_v17 = vld [vmem:[%s665_s26 + $0x78] sm:$0xff] }
  0x14   : > { %272 = vmatpush.msra.mxu0 %v204_v3  ;;  %596 = vmatpush.msra.mxu1 %v204_v3  ;;  %v191_v18 = vld [vmem:[%s665_s26 + $0x18] sm:$0xff] }
  0x15   : > { %537 = vmatmul.msk.f32.vlgmr.msra.gmra.mxu0 %vm208_vm0, %v188_v6  ;;  %541 = vmatmul.msk.f32.vlgmr.msra.gmra.mxu1 %vm208_vm0, %v192_v7  ;;  %v195_v19 = vld [vmem:[%s665_s26 + $0x38] sm:$0xff] }
  0x1b   : > { %546 = vmatmul.msk.f32.gmra.mxu2 %vm208_vm0, %v197_v8  ;;  %550 = vmatmul.msk.f32.gmra.mxu3 %vm208_vm0, %v201_v9 }
  0x1d   : > { %538 = vmatmul.msk.f32.gmra.mxu0 %vm208_vm0, %v189_v10  ;;  %542 = vmatmul.msk.f32.gmra.mxu1 %vm208_vm0, %v193_v11 }
  0x23   : > { %547 = vmatmul.msk.f32.gmra.mxu2 %vm208_vm0, %v198_v12  ;;  %551 = vmatmul.msk.f32.gmra.mxu3 %vm208_vm0, %v202_v13 }
  0x25   : > { %539 = vmatmul.msk.f32.gmra.mxu0 %vm208_vm0, %v190_v14  ;;  %543 = vmatmul.msk.f32.gmra.mxu1 %vm208_vm0, %v194_v15 }
  0x2b   : > { %548 = vmatmul.msk.f32.gmra.mxu2 %vm208_vm0, %v199_v16  ;;  %552 = vmatmul.msk.f32.gmra.mxu3 %vm208_vm0, %v203_v17 }
  0x2d   : > { %540 = vmatmul.msk.f32.gmra.mxu0 %vm208_vm0, %v191_v18  ;;  %544 = vmatmul.msk.f32.gmra.mxu1 %vm208_vm0, %v195_v19 }
  0x92   : > { %v274_v20 = vpop.f32.mrf.mxu0  ;;  %v286_v21 = vpop.f32.mrf.mxu1 }
  0x93   : > { %v553_v22 = vadd.f32 -1.0, %v274_v20  ;;  %420 = vst.msk [vmem:[%s704_s29] sm:$0xff] %vm419_vm1, %v274_v20  ;;  %v557_v23 = vadd.f32 -1.0, %v286_v21 }
  0x94   : > { %424 = vst.msk [vmem:[%s704_s29 + $0x20] sm:$0xff] %vm419_vm1, %v286_v21 }
  0x95   : > { %vm338_vm2 = vcmp.gt.f32.partialorder %v553_v22, 0.0  ;;  %vm342_vm3 = vcmp.gt.f32.partialorder %v557_v23, 0.0 }
  0x96   : > { %v569_v25 = vsel %vm338_vm2, 1.0, %v616_v24  ;;  %v573_v26 = vsel %vm342_vm3, 1.0, %v616_v24  ;;  %v298_v27 = vpop.f32.mrf.mxu2  ;;  %v310_v28 = vpop.f32.mrf.mxu3 }
  0x97   : > { %v386_v29 = vpack.c.bf16 %v569_v25, %v569_v25  ;;  %v390_v30 = vpack.c.bf16 %v573_v26, %v573_v26  ;;  %v561_v31 = vadd.f32 -1.0, %v298_v27  ;;  %428 = vst.msk [vmem:[%s704_s29 + $0x40] sm:$0xff] %vm419_vm1, %v298_v27  ;;  %v565_v32 = vadd.f32 -1.0, %v310_v28 }
  0x98   : > { %432 = vst.msk [vmem:[%s704_s29 + $0x60] sm:$0xff] %vm419_vm1, %v310_v28 }
  0x99   : > { %403 = vst.msk [vmem:[%s714_s6] sm:$0xf] %vm402_vm4, %v386_v29  ;;  %vm346_vm5 = vcmp.gt.f32.partialorder %v561_v31, 0.0  ;;  %vm350_vm6 = vcmp.gt.f32.partialorder %v565_v32, 0.0 }
  0x9a   : > { %407 = vst.msk [vmem:[%s714_s6 + $0x10] sm:$0xf] %vm402_vm4, %v390_v30  ;;  %v577_v33 = vsel %vm346_vm5, 1.0, %v616_v24  ;;  %v581_v34 = vsel %vm350_vm6, 1.0, %v616_v24  ;;  %v277_v35 = vpop.f32.mrf.mxu0  ;;  %v289_v36 = vpop.f32.mrf.mxu1 }
  0x9b   : > { %v394_v37 = vpack.c.bf16 %v577_v33, %v577_v33  ;;  %v398_v38 = vpack.c.bf16 %v581_v34, %v581_v34  ;;  %v554_v39 = vadd.f32 -1.0, %v277_v35  ;;  %421 = vst.msk [vmem:[%s704_s29 + $0x8] sm:$0xff] %vm419_vm1, %v277_v35  ;;  %v558_v40 = vadd.f32 -1.0, %v289_v36 }
  0x9c   : > { %425 = vst.msk [vmem:[%s704_s29 + $0x28] sm:$0xff] %vm419_vm1, %v289_v36 }
  0x9d   : > { %411 = vst.msk [vmem:[%s714_s6 + $0x20] sm:$0xf] %vm402_vm4, %v394_v37  ;;  %vm339_vm7 = vcmp.gt.f32.partialorder %v554_v39, 0.0  ;;  %vm343_vm8 = vcmp.gt.f32.partialorder %v558_v40, 0.0 }
  0x9e   : > { %415 = vst.msk [vmem:[%s714_s6 + $0x30] sm:$0xf] %vm402_vm4, %v398_v38  ;;  %v570_v41 = vsel %vm339_vm7, 1.0, %v616_v24  ;;  %v574_v42 = vsel %vm343_vm8, 1.0, %v616_v24  ;;  %v301_v43 = vpop.f32.mrf.mxu2  ;;  %v313_v44 = vpop.f32.mrf.mxu3 }
  0x9f   : > { %v387_v45 = vpack.c.bf16 %v570_v41, %v570_v41  ;;  %v391_v46 = vpack.c.bf16 %v574_v42, %v574_v42  ;;  %v562_v47 = vadd.f32 -1.0, %v301_v43  ;;  %429 = vst.msk [vmem:[%s704_s29 + $0x48] sm:$0xff] %vm419_vm1, %v301_v43  ;;  %v566_v48 = vadd.f32 -1.0, %v313_v44 }
  0xa0   : > { %433 = vst.msk [vmem:[%s704_s29 + $0x68] sm:$0xff] %vm419_vm1, %v313_v44 }
  0xa1   : > { %404 = vst.msk [vmem:[%s714_s6 + $0x4] sm:$0xf] %vm402_vm4, %v387_v45  ;;  %vm347_vm9 = vcmp.gt.f32.partialorder %v562_v47, 0.0  ;;  %vm351_vm10 = vcmp.gt.f32.partialorder %v566_v48, 0.0 }
  0xa2   : > { %408 = vst.msk [vmem:[%s714_s6 + $0x14] sm:$0xf] %vm402_vm4, %v391_v46  ;;  %v578_v49 = vsel %vm347_vm9, 1.0, %v616_v24  ;;  %v582_v50 = vsel %vm351_vm10, 1.0, %v616_v24  ;;  %v280_v51 = vpop.f32.mrf.mxu0  ;;  %v292_v52 = vpop.f32.mrf.mxu1 }
  0xa3   : > { %v395_v53 = vpack.c.bf16 %v578_v49, %v578_v49  ;;  %v399_v54 = vpack.c.bf16 %v582_v50, %v582_v50  ;;  %v555_v55 = vadd.f32 -1.0, %v280_v51  ;;  %422 = vst.msk [vmem:[%s704_s29 + $0x10] sm:$0xff] %vm419_vm1, %v280_v51  ;;  %v559_v56 = vadd.f32 -1.0, %v292_v52 }
  0xa4   : > { %426 = vst.msk [vmem:[%s704_s29 + $0x30] sm:$0xff] %vm419_vm1, %v292_v52 }
  0xa5   : > { %412 = vst.msk [vmem:[%s714_s6 + $0x24] sm:$0xf] %vm402_vm4, %v395_v53  ;;  %vm340_vm11 = vcmp.gt.f32.partialorder %v555_v55, 0.0  ;;  %vm344_vm12 = vcmp.gt.f32.partialorder %v559_v56, 0.0 }
  0xa6   : > { %416 = vst.msk [vmem:[%s714_s6 + $0x34] sm:$0xf] %vm402_vm4, %v399_v54  ;;  %v571_v57 = vsel %vm340_vm11, 1.0, %v616_v24  ;;  %v575_v58 = vsel %vm344_vm12, 1.0, %v616_v24  ;;  %v304_v59 = vpop.f32.mrf.mxu2  ;;  %v316_v60 = vpop.f32.mrf.mxu3 }
  0xa7   : > { %v388_v61 = vpack.c.bf16 %v571_v57, %v571_v57  ;;  %v392_v62 = vpack.c.bf16 %v575_v58, %v575_v58  ;;  %v563_v63 = vadd.f32 -1.0, %v304_v59  ;;  %430 = vst.msk [vmem:[%s704_s29 + $0x50] sm:$0xff] %vm419_vm1, %v304_v59  ;;  %v567_v0 = vadd.f32 -1.0, %v316_v60 }
  0xa8   : > { %434 = vst.msk [vmem:[%s704_s29 + $0x70] sm:$0xff] %vm419_vm1, %v316_v60 }
  0xa9   : > { %405 = vst.msk [vmem:[%s714_s6 + $0x8] sm:$0xf] %vm402_vm4, %v388_v61  ;;  %vm348_vm13 = vcmp.gt.f32.partialorder %v563_v63, 0.0  ;;  %vm352_vm14 = vcmp.gt.f32.partialorder %v567_v0, 0.0 }
  0xaa   : > { %409 = vst.msk [vmem:[%s714_s6 + $0x18] sm:$0xf] %vm402_vm4, %v392_v62  ;;  %v579_v1 = vsel %vm348_vm13, 1.0, %v616_v24  ;;  %v583_v2 = vsel %vm352_vm14, 1.0, %v616_v24  ;;  %v283_v3 = vpop.f32.mrf.mxu0  ;;  %v295_v4 = vpop.f32.mrf.mxu1 }
  0xab   : > { %v396_v5 = vpack.c.bf16 %v579_v1, %v579_v1  ;;  %v400_v6 = vpack.c.bf16 %v583_v2, %v583_v2  ;;  %v556_v7 = vadd.f32 -1.0, %v283_v3  ;;  %423 = vst.msk [vmem:[%s704_s29 + $0x18] sm:$0xff] %vm419_vm1, %v283_v3  ;;  %v560_v8 = vadd.f32 -1.0, %v295_v4 }
  0xac   : > { %427 = vst.msk [vmem:[%s704_s29 + $0x38] sm:$0xff] %vm419_vm1, %v295_v4 }
  0xad   : > { %413 = vst.msk [vmem:[%s714_s6 + $0x28] sm:$0xf] %vm402_vm4, %v396_v5  ;;  %vm341_vm15 = vcmp.gt.f32.partialorder %v556_v7, 0.0  ;;  %vm345_vm0 = vcmp.gt.f32.partialorder %v560_v8, 0.0 }
  0xae   : > { %417 = vst.msk [vmem:[%s714_s6 + $0x38] sm:$0xf] %vm402_vm4, %v400_v6  ;;  %v572_v9 = vsel %vm341_vm15, 1.0, %v616_v24  ;;  %v576_v10 = vsel %vm345_vm0, 1.0, %v616_v24  ;;  %v307_v11 = vpop.f32.mrf.mxu2  ;;  %v319_v12 = vpop.f32.mrf.mxu3 }
  0xaf   : > { %v389_v13 = vpack.c.bf16 %v572_v9, %v572_v9  ;;  %v393_v14 = vpack.c.bf16 %v576_v10, %v576_v10  ;;  %v564_v15 = vadd.f32 -1.0, %v307_v11  ;;  %431 = vst.msk [vmem:[%s704_s29 + $0x58] sm:$0xff] %vm419_vm1, %v307_v11  ;;  %v568_v16 = vadd.f32 -1.0, %v319_v12 }
  0xb0   : > { %435 = vst.msk [vmem:[%s704_s29 + $0x78] sm:$0xff] %vm419_vm1, %v319_v12 }
  0xb1   : > { %406 = vst.msk [vmem:[%s714_s6 + $0xc] sm:$0xf] %vm402_vm4, %v389_v13  ;;  %vm349_vm2 = vcmp.gt.f32.partialorder %v564_v15, 0.0  ;;  %vm353_vm3 = vcmp.gt.f32.partialorder %v568_v16, 0.0 }
  0xb2   : > { %410 = vst.msk [vmem:[%s714_s6 + $0x1c] sm:$0xf] %vm402_vm4, %v393_v14  ;;  %v580_v17 = vsel %vm349_vm2, 1.0, %v616_v24  ;;  %v584_v18 = vsel %vm353_vm3, 1.0, %v616_v24 }
  0xb3   : > { %v397_v19 = vpack.c.bf16 %v580_v17, %v580_v17  ;;  %v401_v20 = vpack.c.bf16 %v584_v18, %v584_v18 }
  0xb5   : > { %414 = vst.msk [vmem:[%s714_s6 + $0x2c] sm:$0xf] %vm402_vm4, %v397_v19 }
  0xb6   : > { %418 = vst.msk [vmem:[%s714_s6 + $0x3c] sm:$0xf] %vm402_vm4, %v401_v20 }
  0xb7 PF: > { %s14_s12 = sadd.s32 1, %s614_s12  }
  0xb8   : > { %p11_p4 = scmp.ge.s32.totalorder %s14_s12, 4  }
  0xba   :  { %13 = sbr.rel (!%p11_p4) target bundleno = 1 (0x1), region = 70 }

</bundles_post_ra>
